<compile_context>
chip_gen: v5e
topology: v5e:2x2
jax: 0.10.0
libtpu: 0.0.40
codegen_flags: <defaults>
</compile_context>

<pallas_src>
import functools

import jax
import jax.numpy as jnp
from jax.experimental import pallas as pl
from jax.experimental.pallas import tpu as pltpu

LANE = 128
SUBLANE = 8


def _round_up(n, m):
    return ((n + m - 1) // m) * m


def _pad2(a, target_shape):
    """Zero-pad a 2-D array up to target_shape (no-op if already that shape)."""
    pads = [(0, t - s) for s, t in zip(a.shape, target_shape)]
    if all(p == (0, 0) for p in pads):
        return a
    return jnp.pad(a, pads)


def _mlp_kernel(x_ref, w1_ref, b1_ref, w2_ref, b2_ref, w3_ref, b3_ref, out_ref):
    # Whole hot path (3 matmuls + bias + ReLU) fused per batch tile; everything in VMEM.
    # x arrives f32, unpadded in the feature dim; cast to bf16 in-kernel for the MXU.
    x = x_ref[...].astype(jnp.bfloat16)  # [tile, D_in]

    # fc1 + ReLU (f32 accumulate, f32 bias)
    h1 = jnp.dot(x, w1_ref[...], preferred_element_type=jnp.float32) + b1_ref[...]
    h1 = jnp.maximum(h1, 0.0).astype(jnp.bfloat16)

    # Dropout(p=0.5): identity in eval/inference mode.
    # TODO(synk): training-mode dropout (pltpu.prng_seed + prng_random_bits mask, 1/(1-p) scale).

    # fc2 + ReLU
    h2 = jnp.dot(h1, w2_ref[...], preferred_element_type=jnp.float32) + b2_ref[...]
    h2 = jnp.maximum(h2, 0.0).astype(jnp.bfloat16)

    # fc3 (logits): matmul stays full-width (padded N=128, MXU-friendly), store only the
    # real C logits (narrow masked store, tiny total volume -> no write amplification).
    out = jnp.dot(h2, w3_ref[...], preferred_element_type=jnp.float32) + b3_ref[...]
    out_ref[...] = out[:, : out_ref.shape[-1]]


def prepare_params(params):
    """One-time pad + cast of weights/biases (hoisted out of the per-call hot path).

    Weights -> bf16 padded to 128-lane multiples; biases -> f32 padded rows.
    """
    w1, b1 = params["w1"], params["b1"]
    w2, b2 = params["w2"], params["b2"]
    w3, b3 = params["w3"], params["b3"]
    D_in, H1 = w1.shape
    H2 = w2.shape[1]
    C = w3.shape[1]
    H1p = _round_up(H1, LANE)
    H2p = _round_up(H2, LANE)
    Cp = _round_up(C, LANE)
    return {
        "w1": _pad2(w1, (D_in, H1p)).astype(jnp.bfloat16),
        "b1": _pad2(b1.reshape(1, -1), (1, H1p)).astype(jnp.float32),
        "w2": _pad2(w2, (H1p, H2p)).astype(jnp.bfloat16),
        "b2": _pad2(b2.reshape(1, -1), (1, H2p)).astype(jnp.float32),
        "w3": _pad2(w3, (H2p, Cp)).astype(jnp.bfloat16),
        "b3": _pad2(b3.reshape(1, -1), (1, Cp)).astype(jnp.float32),
        "num_classes": C,  # real (unpadded) class count
    }


@functools.partial(jax.jit, static_argnames=("num_classes", "num_batch_tiles"))
def _forward_impl(x, w1, b1, w2, b2, w3, b3, *, num_classes, num_batch_tiles):
    B, D_in = x.shape
    H1p = w1.shape[1]
    H2p = w2.shape[1]
    Cp = w3.shape[1]
    C = num_classes

    # Single grid step on single-TC v5e/v6e; num_batch_tiles=2 on v7x uses both TCs.
    batch_tile = _round_up(pl.cdiv(B, num_batch_tiles), SUBLANE)
    Bp = batch_tile * num_batch_tiles
    xp = x if Bp == B else jnp.pad(x, ((0, Bp - B), (0, 0)))

    flops = 2 * Bp * (D_in * H1p + H1p * H2p + H2p * Cp)
    bytes_accessed = (
        xp.size * 4
        + (w1.size + w2.size + w3.size) * 2
        + (b1.size + b2.size + b3.size) * 4
        + Bp * C * 4
    )

    out = pl.pallas_call(
        _mlp_kernel,
        out_shape=jax.ShapeDtypeStruct((Bp, C), jnp.float32),
        grid_spec=pltpu.PrefetchScalarGridSpec(
            num_scalar_prefetch=0,
            grid=(num_batch_tiles,),
            in_specs=[
                # x: tiled along the batch axis, full (unpadded) feature dim.
                pl.BlockSpec((batch_tile, D_in), lambda i: (i, 0)),
                # weights / biases: full padded arrays, resident every step (tiny VMEM).
                pl.BlockSpec((D_in, H1p), lambda i: (0, 0)),
                pl.BlockSpec((1, H1p), lambda i: (0, 0)),
                pl.BlockSpec((H1p, H2p), lambda i: (0, 0)),
                pl.BlockSpec((1, H2p), lambda i: (0, 0)),
                pl.BlockSpec((H2p, Cp), lambda i: (0, 0)),
                pl.BlockSpec((1, Cp), lambda i: (0, 0)),
            ],
            # Narrow (C-wide) output: C equals the full last dim, so this is legal and
            # avoids padded-f32 write amplification + a post-kernel class slice.
            out_specs=pl.BlockSpec((batch_tile, C), lambda i: (i, 0)),
        ),
        compiler_params=pltpu.CompilerParams(
            dimension_semantics=("parallel",),
        ),
        cost_estimate=pl.CostEstimate(
            flops=flops, transcendentals=0, bytes_accessed=bytes_accessed
        ),
    )(xp, w1, b1, w2, b2, w3, b3)

    return out if Bp == B else out[:B]


def neural_net_forward(x, prepared, *, num_batch_tiles=1):
    """Forward pass. x: [B, input_size] f32; prepared = prepare_params(params)."""
    return _forward_impl(
        x,
        prepared["w1"], prepared["b1"],
        prepared["w2"], prepared["b2"],
        prepared["w3"], prepared["b3"],
        num_classes=int(prepared["num_classes"]),
        num_batch_tiles=num_batch_tiles,
    )


def init_params(key, input_size, hidden_size_list, num_classes):
    """Deterministic init mimicking nn.Linear default (U[-1/sqrt(fan_in), 1/sqrt(fan_in)])."""
    dims = [input_size, hidden_size_list[0], hidden_size_list[1], num_classes]
    params = {}
    for idx in range(3):
        fan_in, fan_out = dims[idx], dims[idx + 1]
        key, kw, kb = jax.random.split(key, 3)
        bound = 1.0 / jnp.sqrt(float(fan_in))
        params[f"w{idx + 1}"] = jax.random.uniform(
            kw, (fan_in, fan_out), jnp.float32, minval=-bound, maxval=bound
        )
        params[f"b{idx + 1}"] = jax.random.uniform(
            kb, (1, fan_out), jnp.float32, minval=-bound, maxval=bound
        )
    return params


def _reference_forward(x, params, cast=None):
    """Pure-JAX reference. cast=jnp.bfloat16 mirrors the kernel's matmul dtypes."""
    def mm(a, w):
        if cast is not None:
            a = a.astype(cast)
            w = w.astype(cast)
        return jnp.dot(a, w, preferred_element_type=jnp.float32)

    h1 = jnp.maximum(mm(x, params["w1"]) + params["b1"], 0.0)
    h2 = jnp.maximum(mm(h1, params["w2"]) + params["b2"], 0.0)
    return mm(h2, params["w3"]) + params["b3"]


if __name__ == "__main__":
    # NeuralNet(input_size=64, hidden_size_list=[32, 32], num_classes=2), small batch=16.
    batch, input_size, hidden, num_classes = 16, 64, [32, 32], 2

    key = jax.random.PRNGKey(0)
    key, kx = jax.random.split(key)
    x = jax.random.normal(kx, (batch, input_size), jnp.float32)
    params = init_params(key, input_size, hidden, num_classes)

    # One-time weight preparation (pad + bf16 cast), off the per-call hot path.
    prepared = jax.tree_util.tree_map(jax.block_until_ready, prepare_params(params))

    # Default num_batch_tiles=1 (single-TC v5e/v6e); use 2 on v7x to engage both TCs.
    out = neural_net_forward(x, prepared, num_batch_tiles=1)
    out = jax.block_until_ready(out)
    assert out.shape == (batch, num_classes)

    # Exact-precision check (same bf16-matmul / f32-accumulate recipe as the kernel).
    ref_bf16 = _reference_forward(x, params, cast=jnp.bfloat16)
    assert jnp.allclose(out, ref_bf16, atol=1e-4, rtol=1e-3), "mismatch vs bf16 reference"

    # Full-f32 module semantics check (loose tolerance to absorb bf16 matmul rounding).
    ref_f32 = _reference_forward(x, params, cast=None)
    assert jnp.allclose(out, ref_f32, atol=1e-1, rtol=1e-1), "mismatch vs f32 reference"

    print("KERNEL_OK")
</pallas_src>

<mosaic_0001>
module attributes {stable_mosaic.version = 11 : i64} {
  func.func @_mlp_kernel(%arg0: i32, %arg1: memref<16x64xf32, #tpu.memory_space<vmem>>, %arg2: memref<64x128xbf16, #tpu.memory_space<vmem>>, %arg3: memref<1x128xf32, #tpu.memory_space<vmem>>, %arg4: memref<128x128xbf16, #tpu.memory_space<vmem>>, %arg5: memref<1x128xf32, #tpu.memory_space<vmem>>, %arg6: memref<128x128xbf16, #tpu.memory_space<vmem>>, %arg7: memref<1x128xf32, #tpu.memory_space<vmem>>, %arg8: memref<16x2xf32, #tpu.memory_space<vmem>>) attributes {dimension_semantics = [#tpu.dimension_semantics<parallel>], iteration_bounds = array<i64: 1>, scalar_prefetch = 0 : i64, scratch_operands = 0 : i64, tpu.core_type = #tpu.core_type<tc>, window_params = [{transform_indices = @transform_0, window_bounds = array<i64: 16, 64>}, {pipeline_mode = #tpu.pipeline_mode<synchronous>, transform_indices = @transform_1, window_bounds = array<i64: 64, 128>}, {pipeline_mode = #tpu.pipeline_mode<synchronous>, transform_indices = @transform_2, window_bounds = array<i64: 1, 128>}, {pipeline_mode = #tpu.pipeline_mode<synchronous>, transform_indices = @transform_3, window_bounds = array<i64: 128, 128>}, {pipeline_mode = #tpu.pipeline_mode<synchronous>, transform_indices = @transform_4, window_bounds = array<i64: 1, 128>}, {pipeline_mode = #tpu.pipeline_mode<synchronous>, transform_indices = @transform_5, window_bounds = array<i64: 128, 128>}, {pipeline_mode = #tpu.pipeline_mode<synchronous>, transform_indices = @transform_6, window_bounds = array<i64: 1, 128>}, {transform_indices = @transform_7, window_bounds = array<i64: 16, 2>}]} {
    %c0 = arith.constant 0 : index
    %c0_0 = arith.constant 0 : index
    %0 = vector.load %arg1[%c0, %c0_0] : memref<16x64xf32, #tpu.memory_space<vmem>>, vector<16x64xf32>
    %1 = arith.truncf %0 : vector<16x64xf32> to vector<16x64xbf16>
    %c0_1 = arith.constant 0 : index
    %c0_2 = arith.constant 0 : index
    %2 = vector.load %arg2[%c0_1, %c0_2] : memref<64x128xbf16, #tpu.memory_space<vmem>>, vector<64x128xbf16>
    %cst = arith.constant dense<0.000000e+00> : vector<16x128xf32>
    %3 = tpu.matmul %1, %2, %cst {dimension_numbers = #tpu.dot_dimension_numbers<[1], [0], [0], [1], [0, 0, 1, 1], [], []>} : vector<16x64xbf16>, vector<64x128xbf16>, vector<16x128xf32> -> vector<16x128xf32>
    %c0_3 = arith.constant 0 : index
    %c0_4 = arith.constant 0 : index
    %4 = vector.load %arg3[%c0_3, %c0_4] : memref<1x128xf32, #tpu.memory_space<vmem>>, vector<1x128xf32>
    %5 = vector.broadcast %4 : vector<1x128xf32> to vector<16x128xf32>
    %6 = arith.addf %3, %5 : vector<16x128xf32>
    %cst_5 = arith.constant 0.000000e+00 : f32
    %7 = vector.broadcast %cst_5 : f32 to vector<16x128xf32>
    %8 = arith.maximumf %6, %7 : vector<16x128xf32>
    %9 = arith.truncf %8 : vector<16x128xf32> to vector<16x128xbf16>
    %c0_6 = arith.constant 0 : index
    %c0_7 = arith.constant 0 : index
    %10 = vector.load %arg4[%c0_6, %c0_7] : memref<128x128xbf16, #tpu.memory_space<vmem>>, vector<128x128xbf16>
    %cst_8 = arith.constant dense<0.000000e+00> : vector<16x128xf32>
    %11 = tpu.matmul %9, %10, %cst_8 {dimension_numbers = #tpu.dot_dimension_numbers<[1], [0], [0], [1], [0, 0, 1, 1], [], []>} : vector<16x128xbf16>, vector<128x128xbf16>, vector<16x128xf32> -> vector<16x128xf32>
    %c0_9 = arith.constant 0 : index
    %c0_10 = arith.constant 0 : index
    %12 = vector.load %arg5[%c0_9, %c0_10] : memref<1x128xf32, #tpu.memory_space<vmem>>, vector<1x128xf32>
    %13 = vector.broadcast %12 : vector<1x128xf32> to vector<16x128xf32>
    %14 = arith.addf %11, %13 : vector<16x128xf32>
    %cst_11 = arith.constant 0.000000e+00 : f32
    %15 = vector.broadcast %cst_11 : f32 to vector<16x128xf32>
    %16 = arith.maximumf %14, %15 : vector<16x128xf32>
    %17 = arith.truncf %16 : vector<16x128xf32> to vector<16x128xbf16>
    %c0_12 = arith.constant 0 : index
    %c0_13 = arith.constant 0 : index
    %18 = vector.load %arg6[%c0_12, %c0_13] : memref<128x128xbf16, #tpu.memory_space<vmem>>, vector<128x128xbf16>
    %cst_14 = arith.constant dense<0.000000e+00> : vector<16x128xf32>
    %19 = tpu.matmul %17, %18, %cst_14 {dimension_numbers = #tpu.dot_dimension_numbers<[1], [0], [0], [1], [0, 0, 1, 1], [], []>} : vector<16x128xbf16>, vector<128x128xbf16>, vector<16x128xf32> -> vector<16x128xf32>
    %c0_15 = arith.constant 0 : index
    %c0_16 = arith.constant 0 : index
    %20 = vector.load %arg7[%c0_15, %c0_16] : memref<1x128xf32, #tpu.memory_space<vmem>>, vector<1x128xf32>
    %21 = vector.broadcast %20 : vector<1x128xf32> to vector<16x128xf32>
    %22 = arith.addf %19, %21 : vector<16x128xf32>
    %23 = vector.extract_strided_slice %22 {offsets = [0, 0], sizes = [16, 2], strides = [1, 1]} : vector<16x128xf32> to vector<16x2xf32>
    %c0_17 = arith.constant 0 : index
    %c0_18 = arith.constant 0 : index
    %24 = vector.load %arg8[%c0_17, %c0_18] : memref<16x2xf32, #tpu.memory_space<vmem>>, vector<16x2xf32>
    tpu.vector_store %arg8[%c0_17, %c0_18], %23 {strides = array<i32>} : memref<16x2xf32, #tpu.memory_space<vmem>>, vector<16x2xf32>,
    return
  }
  func.func @transform_0(%arg0: i32) -> (i32, i32) {
    %c0_i32 = arith.constant 0 : i32
    %c0_i32_0 = arith.constant 0 : i32
    return %arg0, %c0_i32 : i32, i32
  }
  func.func @transform_1(%arg0: i32) -> (i32, i32) {
    %c0_i32 = arith.constant 0 : i32
    %c0_i32_0 = arith.constant 0 : i32
    %c0_i32_1 = arith.constant 0 : i32
    return %c0_i32, %c0_i32_0 : i32, i32
  }
  func.func @transform_2(%arg0: i32) -> (i32, i32) {
    %c0_i32 = arith.constant 0 : i32
    %c0_i32_0 = arith.constant 0 : i32
    %c0_i32_1 = arith.constant 0 : i32
    return %c0_i32, %c0_i32_0 : i32, i32
  }
  func.func @transform_3(%arg0: i32) -> (i32, i32) {
    %c0_i32 = arith.constant 0 : i32
    %c0_i32_0 = arith.constant 0 : i32
    %c0_i32_1 = arith.constant 0 : i32
    return %c0_i32, %c0_i32_0 : i32, i32
  }
  func.func @transform_4(%arg0: i32) -> (i32, i32) {
    %c0_i32 = arith.constant 0 : i32
    %c0_i32_0 = arith.constant 0 : i32
    %c0_i32_1 = arith.constant 0 : i32
    return %c0_i32, %c0_i32_0 : i32, i32
  }
  func.func @transform_5(%arg0: i32) -> (i32, i32) {
    %c0_i32 = arith.constant 0 : i32
    %c0_i32_0 = arith.constant 0 : i32
    %c0_i32_1 = arith.constant 0 : i32
    return %c0_i32, %c0_i32_0 : i32, i32
  }
  func.func @transform_6(%arg0: i32) -> (i32, i32) {
    %c0_i32 = arith.constant 0 : i32
    %c0_i32_0 = arith.constant 0 : i32
    %c0_i32_1 = arith.constant 0 : i32
    return %c0_i32, %c0_i32_0 : i32, i32
  }
  func.func @transform_7(%arg0: i32) -> (i32, i32) {
    %c0_i32 = arith.constant 0 : i32
    %c0_i32_0 = arith.constant 0 : i32
    return %arg0, %c0_i32 : i32, i32
  }
}

</mosaic_0001>

<bundles_post_ra>
// kernel: _forward_impl.1
= control target key start
LH: loop header
LB: loop body
LE: loop exit
PB: predicated region body
PF: predicated region fallthrough
CT: control target
= control target key end

     0   :  { %12 = vsyncpa [#allocation3], 0  ;;  %s616_s0 = inlined_call_operand.hbm [shape: f32[16,64], index: 0, kind: input, shape index: {}]   ;;  %s617_s1 = inlined_call_operand.hbm [shape: bf16[64,128], index: 1, kind: input, shape index: {}]   ;;  %s618_s2 = inlined_call_operand.vmem [shape: f32[1,128], index: 2, kind: input, shape index: {}]   ;;  %s619_s3 = inlined_call_operand.hbm [shape: bf16[128,128], index: 3, kind: input, shape index: {}]   ;;  %s620_s4 = inlined_call_operand.vmem [shape: f32[1,128], index: 4, kind: input, shape index: {}]   ;;  %s621_s5 = inlined_call_operand.hbm [shape: bf16[128,128], index: 5, kind: input, shape index: {}]   ;;  %s622_s6 = inlined_call_operand.vmem [shape: f32[1,128], index: 6, kind: input, shape index: {}]   ;;  %s623_s7 = inlined_call_operand.vmem [shape: f32[16,2], index: 7, kind: output, shape index: {}]  }
   0x1   :  { %13 = vsyncpa [#allocation5], 0  ;;  %s32_s26 = sshll.u32 %s617_s1, 4  ;;  %s33_s26 = int_to_ptr.hbm [resolvable:$true] %s32_s26 }
   0x2   :  { %14 = vsyncpa [#allocation8], 0  ;;  %s541_s27 = smov [#allocation4]   ;;  %s19_s8 = sshll.u32 %s616_s0, 4  ;;  %s20_s8 = int_to_ptr.hbm [resolvable:$true] %s19_s8 }
   0x3   :  { %s34_s28 = sshll.u32 %s541_s27, 4  ;;  %s542_s9 = smov 64   ;;  %s35_s28 = int_to_ptr.vmem [resolvable:$true] %s34_s28 }
   0x4   :  { %s543_s10 = smov 4   ;;  %s544_s11 = smov [#allocation2]  }
   0x5   :  { %40 = dma.hbm_to_vmem [thread:$0]  %s33_s26, 512, %s35_s28, [#allocation5], %s542_s9, %s542_s9, %s543_s10  }
   0x6   :  { %s21_s12 = sshll.u32 %s544_s11, 4  ;;  %s545_s13 = smov 128   ;;  %s22_s12 = int_to_ptr.vmem [resolvable:$true] %s21_s12 }
   0x7   :  { %s546_s14 = smov 8   ;;  %s47_s16 = sshll.u32 %s619_s3, 4  ;;  %s48_s16 = int_to_ptr.hbm [resolvable:$true] %s47_s16 }
   0x8   :  { %27 = dma.hbm_to_vmem [thread:$0]  %s20_s8, 256, %s22_s12, [#allocation3], %s545_s13, %s545_s13, %s546_s14  }
   0x9   :  { %s547_s17 = smov [#allocation6]   ;;  %s62_s20 = sshll.u32 %s621_s5, 4  ;;  %s63_s20 = int_to_ptr.hbm [resolvable:$true] %s62_s20 }
   0xa   :  { %s49_s18 = sshll.u32 %s547_s17, 4  ;;  %s548_s21 = smov [#allocation7]   ;;  %s50_s18 = int_to_ptr.vmem [resolvable:$true] %s49_s18 }
   0xb   :  { %55 = dma.hbm_to_vmem [thread:$0]  %s48_s16, 1024, %s50_s18, [#allocation5], %s542_s9, %s542_s9, %s543_s10  }
   0xc   :  { %s64_s22 = sshll.u32 %s548_s21, 4  ;;  %s65_s22 = int_to_ptr.vmem [resolvable:$true] %s64_s22 }
   0xd   :  { %70 = dma.hbm_to_vmem [thread:$0]  %s63_s20, 1024, %s65_s22, [#allocation8], %s542_s9, %s542_s9, %s543_s10  }
   0xe   :  { %535 = dma.done.wait [#allocation3], 256  }
   0xf   :  { %536 = vsyncadd [#allocation3], 4294967040 }
  0x10   :  { %537 = dma.done.wait [#allocation5], 1536  }
  0x11   :  { %538 = vsyncadd [#allocation5], 4294965760 }
  0x12   :  { %539 = dma.done.wait [#allocation8], 1024  }
  0x13   :  { %540 = vsyncadd [#allocation8], 4294966272  ;;  %v411_v0 = vld [vmem:[#allocation4 + $0x18] sm:$0xff]  ;;  %v410_v1 = vld [vmem:[#allocation4 + $0x10] sm:$0xff]  ;;  %vm129_vm0 = vcmask 523264   ;;  %vm317_vm1 = vcmask 15360  }
  0x14   :  { %137 = vmatpush.bf16.msra.mxu0 %v411_v0  ;;  %v419_v2 = vld [vmem:[#allocation6 + $0x38] sm:$0xff]  ;;  %v418_v3 = vld [vmem:[#allocation6 + $0x30] sm:$0xff]  ;;  %v409_v4 = vld [vmem:[#allocation4 + $0x8] sm:$0xff] }
  0x15   :  { %218 = vmatpush.bf16.msra.mxu1 %v419_v2  ;;  %v417_v5 = vld [vmem:[#allocation6 + $0x28] sm:$0xff]  ;;  %v408_v6 = vld [vmem:[#allocation4] sm:$0xff]  ;;  %v90_v7 = vld [vmem:[#allocation2] sm:$0xff] }
  0x16   :  { %v91_v8 = vld [vmem:[#allocation2 + $0x8] sm:$0xff]  ;;  %v416_v9 = vld [vmem:[#allocation6 + $0x20] sm:$0xff]  ;;  %v414_v12 = vld [vmem:[#allocation6 + $0x10] sm:$0xff] }
  0x17   :  { %v92_v10 = vpack.c.bf16 %v91_v8, %v90_v7  ;;  %v415_v11 = vld [vmem:[#allocation6 + $0x18] sm:$0xff]  ;;  %v413_v13 = vld [vmem:[#allocation6 + $0x8] sm:$0xff]  ;;  %v412_v14 = vld [vmem:[#allocation6] sm:$0xff] }
  0x18   :  { %138 = vmatpush.bf16.msra.mxu0 %v410_v1  ;;  %v427_v15 = vld [vmem:[#allocation7 + $0x38] sm:$0xff]  ;;  %v426_v16 = vld [vmem:[#allocation7 + $0x30] sm:$0xff]  ;;  %v425_v17 = vld [vmem:[#allocation7 + $0x28] sm:$0xff] }
  0x19   :  { %219 = vmatpush.bf16.msra.mxu1 %v418_v3  ;;  %303 = vmatpush.bf16.msra.mxu2 %v427_v15  ;;  %v424_v18 = vld [vmem:[#allocation7 + $0x20] sm:$0xff]  ;;  %v436_v20 = vld [vmem:[%s618_s2] ss:$0 sm:$0xff]  ;;  %v423_v27 = vld [vmem:[#allocation7 + $0x18] sm:$0xff] }
  0x1a   :  { %v422_v28 = vld [vmem:[#allocation7 + $0x10] sm:$0xff]  ;;  %v421_v29 = vld [vmem:[#allocation7 + $0x8] sm:$0xff]  ;;  %v420_v30 = vld [vmem:[#allocation7] sm:$0xff] }
  0x1b   :  { %v437_v32 = vld [vmem:[%s620_s4] ss:$0 sm:$0xff] }
  0x1c   :  { %139 = vmatpush.bf16.msra.mxu0 %v409_v4  ;;  %v438_v39 = vld [vmem:[%s622_s6] ss:$0 sm:$0xff] }
  0x1d   :  { %220 = vmatpush.bf16.msra.mxu1 %v417_v5  ;;  %304 = vmatpush.bf16.msra.mxu2 %v426_v16 }
  0x20   :  { %140 = vmatpush.bf16.msra.mxu0 %v408_v6 }
  0x21   :  { %221 = vmatpush.bf16.msra.mxu1 %v416_v9  ;;  %305 = vmatpush.bf16.msra.mxu2 %v425_v17 }
  0x23   :  { %343 = vmatmul.msk.bf16.vlgmr.msra.gmra.mxu0 %vm129_vm0, %v92_v10 }
  0x25   :  { %222 = vmatpush.bf16.msra.mxu1 %v415_v11  ;;  %306 = vmatpush.bf16.msra.mxu2 %v424_v18 }
  0x29   :  { %223 = vmatpush.bf16.msra.mxu1 %v414_v12  ;;  %307 = vmatpush.bf16.msra.mxu2 %v423_v27 }
  0x2d   :  { %224 = vmatpush.bf16.msra.mxu1 %v413_v13  ;;  %308 = vmatpush.bf16.msra.mxu2 %v422_v28 }
  0x31   :  { %225 = vmatpush.bf16.msra.mxu1 %v412_v14  ;;  %309 = vmatpush.bf16.msra.mxu2 %v421_v29 }
  0x35   :  { %310 = vmatpush.bf16.msra.mxu2 %v420_v30 }
  0xa0   :  { %v142_v19 = vpop.f32.mrf.mxu0 }
  0xa1   :  { %v143_v21 = vadd.f32 %v436_v20, %v142_v19 }
  0xa3   :  { %v147_v24 = vmax.f32 %v143_v21, 0.0 }
  0xa8   :  { %v144_v22 = vpop.f32.mrf.mxu0 }
  0xa9   :  { %v145_v23 = vadd.f32 %v436_v20, %v144_v22 }
  0xab   :  { %v148_v25 = vmax.f32 %v145_v23, 0.0 }
  0xad   :  { %v149_v26 = vpack.c.bf16 %v148_v25, %v147_v24 }
  0xaf   :  { %226 = vmatmul.bf16.vlgmr.msra.gmra.mxu1 %v149_v26 }
 0x12c   :  { %v227_v31 = vpop.f32.mrf.mxu1 }
 0x12d   :  { %v228_v33 = vadd.f32 %v437_v32, %v227_v31 }
 0x12f   :  { %v232_v36 = vmax.f32 %v228_v33, 0.0 }
 0x134   :  { %v229_v34 = vpop.f32.mrf.mxu1 }
 0x135   :  { %v230_v35 = vadd.f32 %v437_v32, %v229_v34 }
 0x137   :  { %v233_v37 = vmax.f32 %v230_v35, 0.0 }
 0x139   :  { %v234_v38 = vpack.c.bf16 %v233_v37, %v232_v36 }
 0x13b   :  { %311 = vmatmul.bf16.vlgmr.msra.gmra.mxu2 %v234_v38 }
 0x1be   :  { %v312_v40 = vpop.f32.mrf.mxu2 }
 0x1bf   :  { %v313_v41 = vadd.f32 %v438_v39, %v312_v40 }
 0x1c1   :  { %318 = vst.msk [vmem:[%s623_s7] sm:$0xff] %vm317_vm1, %v313_v41 }
 0x1c6   :  { %v314_v42 = vpop.f32.mrf.mxu2 }
 0x1c7   :  { %v315_v43 = vadd.f32 %v438_v39, %v314_v42 }
 0x1c9   :  { %319 = vst.msk [vmem:[%s623_s7 + $0x8] sm:$0xff] %vm317_vm1, %v315_v43 }
 0x1ca   :  { %324 = vsyncpa [#allocation3], 1 }
 0x1cb   :  { %325 = vsyncpa [#allocation5], 1 }
 0x1cc   :  { %326 = vsyncpa [#allocation8], 1 }

</bundles_post_ra>
